<compile_context>
chip_gen: v5e
topology: v5e:2x2
jax: 0.10.0
libtpu: 0.0.40
codegen_flags: <defaults>
</compile_context>

<pallas_src>
import jax
import jax.numpy as jnp
from jax.experimental import pallas as pl
from jax.experimental.pallas import tpu as pltpu


def policy_net_kernel(x_ref, aux_ref, gru_ref, fc_ref, out_ref, h_sc, hl_sc):
    Bt, Ap = out_ref.shape
    D = x_ref.shape[2]
    H = gru_ref.shape[1] // 3
    TC = x_ref.shape[1] // Bt                      # timesteps in this chunk
    c = pl.program_id(1)
    nct = pl.num_programs(1)

    # --- reset carried state at the start of each batch tile -----------------
    @pl.when(c == 0)
    def _():
        h_sc[...] = jnp.zeros_like(h_sc)
        hl_sc[...] = jnp.zeros_like(hl_sc)

    x2 = x_ref[0]                                   # (TC*Bt, D)

    # --- unpack packed GRU slab (static ref slices, once per call) -----------
    whh = gru_ref[0:H, :]                           # (H, 3H) fused recurrence RHS
    wih = gru_ref[H:H + D, :]                       # (D, 3H)
    bgi = gru_ref[H + D:H + D + 1, :]               # (1, 3H) folded input-side bias
    bnh = gru_ref[H + D + 1:H + D + 2, 2 * H:3 * H] # (1, H)  b_hn

    # --- hoisted input projection + folded biases: one MXU pass over chunk ---
    gi = jnp.dot(x2, wih, preferred_element_type=jnp.float32) + bgi   # (TC*Bt, 3H)

    len_f = aux_ref[:, Ap:Ap + 1]                   # (Bt, 1) lengths as float

    h = h_sc[...]
    h_last = hl_sc[...]

    # Static unroll over the (bounded) chunk; one fused matmul per step.
    for t in range(TC):
        lo = t * Bt                                  # sublane-aligned (multiple of 8)
        gh = jnp.dot(h, whh, preferred_element_type=jnp.float32)      # (Bt, 3H)
        # PyTorch GRU gate order: reset, update, new.  r|z packed (one EUP call).
        rz = jax.nn.sigmoid(gi[lo:lo + Bt, 0:2 * H] + gh[:, 0:2 * H]) # (Bt, 2H)
        r = rz[:, 0:H]
        z = rz[:, H:2 * H]
        n = jnp.tanh(gi[lo:lo + Bt, 2 * H:3 * H] + r * (gh[:, 2 * H:3 * H] + bnh))
        h = n + z * (h - n)                          # == (1-z)*n + z*h
        # Capture hidden state at each sequence's last valid (global) timestep.
        t_glob = (c * TC + (t + 1)).astype(jnp.float32)
        h_last = jnp.where(len_f == t_glob, h, h_last)

    h_sc[...] = h
    hl_sc[...] = h_last

    # --- head (fc1+ReLU -> fc2 -> masked softmax) only on the last chunk -----
    @pl.when(c == nct - 1)
    def _():
        hl = hl_sc[...]
        w1 = fc_ref[0:H, Ap:Ap + H]
        b1 = fc_ref[H:H + 1, Ap:Ap + H]
        y = jnp.maximum(jnp.dot(hl, w1, preferred_element_type=jnp.float32) + b1, 0.0)

        w2 = fc_ref[0:H, 0:Ap]
        b2 = fc_ref[H:H + 1, 0:Ap]
        logits = jnp.dot(y, w2, preferred_element_type=jnp.float32) + b2

        masked = logits + aux_ref[:, 0:Ap]          # additive -inf mask bias
        m = jnp.max(masked, axis=1, keepdims=True)
        e = jnp.exp(masked - m)
        s = jnp.sum(e, axis=1, keepdims=True)
        out_ref[...] = e * pl.reciprocal(s, approx=False)


def policy_net_forward(x_btd, lengths, action_mask, params):
    """PolicyNet forward.

    x_btd:       (B, T, D) float32, zero-padded past each sequence's length.
    lengths:     (B,) int32 in [1, T].
    action_mask: (B, A) int32, nonzero == mask that action's logit to -inf.
    """
    wih_t, whh_t, bih, bhh, w1_t, b1, w2_t, b2 = params
    B, T, D = x_btd.shape
    H = whh_t.shape[0]
    A = w2_t.shape[1]
    AP = 128                                           # lane-dense padded action dim
    f32 = jnp.float32

    # Batch tile (parallel grid axis).  BT=64 for mid-size batches keeps nbt
    # even so both v7x TensorCores are used; tiny batches get one 8-row tile.
    if B >= 256:
        BT = 128
    elif B > 64:
        BT = 64
    else:
        BT = ((B + 7) // 8) * 8
    BP = ((B + BT - 1) // BT) * BT
    nbt = BP // BT

    # Time chunk ("arbitrary" grid axis); bounds resident VMEM & unroll length.
    TC = T if T <= 16 else 16
    TP = ((T + TC - 1) // TC) * TC
    nct = TP // TC

    # --- packed input #1: x, time-major within each batch tile --------------
    x_tbd = jnp.transpose(x_btd, (1, 0, 2))                        # (T, B, D)
    x_tbd = jnp.pad(x_tbd, ((0, TP - T), (0, BP - B), (0, 0)))     # (TP, BP, D)
    x_k = (x_tbd.reshape(TP, nbt, BT, D)
                .transpose(1, 0, 2, 3)
                .reshape(nbt, TP * BT, D))

    # --- packed input #2: aux = [additive mask bias | lengths-as-float] -----
    mbias = jnp.where(action_mask != 0, -jnp.inf, 0.0).astype(f32)            # (B, A)
    mbias = jnp.pad(mbias, ((0, 0), (0, AP - A)), constant_values=-jnp.inf)   # pad actions masked
    mbias = jnp.pad(mbias, ((0, BP - B), (0, 0)), constant_values=0.0)        # pad rows unmasked (no NaN)
    len_col = jnp.zeros((BP, AP), f32).at[:B, 0].set(lengths.astype(f32))
    aux = jnp.concatenate([mbias, len_col], axis=1)                           # (BP, 2*AP)

    # --- packed input #3: GRU slab [W_hh^T ; W_ih^T ; b_gi ; b_hh] -----------
    # b_gi folds (b_ih + b_hh) for the r/z gates and b_ih for the n gate, so the
    # kernel adds it once to the hoisted input projection.
    b_gi = bih + jnp.concatenate([bhh[:, :2 * H], jnp.zeros_like(bhh[:, 2 * H:])], axis=1)
    gru_slab = jnp.concatenate([whh_t, wih_t, b_gi, bhh], axis=0)             # (H+D+2, 3H)

    # --- packed input #4: FC slab, W2 block first so it is lane-aligned ------
    left = jnp.concatenate([jnp.pad(w2_t, ((0, 0), (0, AP - A))),
                            jnp.pad(b2, ((0, 0), (0, AP - A)))], axis=0)      # (H+1, AP)
    right = jnp.concatenate([w1_t, b1], axis=0)                               # (H+1, H)
    fc_slab = jnp.concatenate([left, right], axis=1)                          # (H+1, AP+H)

    out = pl.pallas_call(
        policy_net_kernel,
        out_shape=jax.ShapeDtypeStruct((BP, AP), f32),
        grid=(nbt, nct),
        in_specs=[
            pl.BlockSpec((1, TC * BT, D), lambda i, c: (i, c, 0)),
            pl.BlockSpec((BT, 2 * AP), lambda i, c: (i, 0)),
            pl.BlockSpec((H + D + 2, 3 * H), lambda i, c: (0, 0)),   # weights replicated
            pl.BlockSpec((H + 1, AP + H), lambda i, c: (0, 0)),      # weights replicated
        ],
        out_specs=pl.BlockSpec((BT, AP), lambda i, c: (i, 0)),
        scratch_shapes=[pltpu.VMEM((BT, H), jnp.float32),            # h
                        pltpu.VMEM((BT, H), jnp.float32)],           # h_last
        compiler_params=pltpu.CompilerParams(
            dimension_semantics=("parallel", "arbitrary")),
    )(x_k, aux, gru_slab, fc_slab)
    return out[:B, :A]


def reference_forward(x_btd, lengths, action_mask, params):
    """Pure-JAX reference matching torch.nn.GRU / Linear semantics."""
    (wih_t, whh_t, bih, bhh, w1_t, b1, w2_t, b2) = params
    B, T, D = x_btd.shape
    H = whh_t.shape[0]
    h = jnp.zeros((B, H), jnp.float32)
    h_last = jnp.zeros((B, H), jnp.float32)
    for t in range(T):
        x_t = x_btd[:, t, :]
        gi = x_t @ wih_t + bih
        gh = h @ whh_t + bhh
        r = jax.nn.sigmoid(gi[:, 0:H] + gh[:, 0:H])
        z = jax.nn.sigmoid(gi[:, H:2 * H] + gh[:, H:2 * H])
        n = jnp.tanh(gi[:, 2 * H:3 * H] + r * gh[:, 2 * H:3 * H])
        h = (1.0 - z) * n + z * h
        h_last = jnp.where((lengths == (t + 1))[:, None], h, h_last)
    y = jnp.maximum(h_last @ w1_t + b1, 0.0)
    logits = y @ w2_t + b2
    masked = jnp.where(action_mask != 0, -jnp.inf, logits)
    return jax.nn.softmax(masked, axis=1)


if __name__ == "__main__":
    # Small shapes implied by the module: variable-length obs sequences.
    obs_dim, hidden_dim, action_dim = 4, 32, 4
    B, T = 2, 8
    D, H, A = obs_dim, hidden_dim, action_dim

    key = jax.random.PRNGKey(0)
    ks = jax.random.split(key, 12)

    # Deterministic parameter init (PyTorch-style U(-1/sqrt(H), 1/sqrt(H))),
    # pre-transposed to (in, out) for the kernel.
    k = 1.0 / jnp.sqrt(jnp.float32(H))
    u = lambda kk, shape: jax.random.uniform(kk, shape, jnp.float32, -k, k)
    wih_t = u(ks[0], (D, 3 * H))        # = weight_ih_l0.T
    whh_t = u(ks[1], (H, 3 * H))        # = weight_hh_l0.T
    bih = u(ks[2], (1, 3 * H))
    bhh = u(ks[3], (1, 3 * H))
    w1_t = u(ks[4], (H, H))             # = fc1.weight.T
    b1 = u(ks[5], (1, H))
    w2_t = u(ks[6], (H, A))             # = fc2.weight.T
    b2 = u(ks[7], (1, A))
    params = (wih_t, whh_t, bih, bhh, w1_t, b1, w2_t, b2)

    # Variable-length sequences, padded to T (pad_sequence equivalent).
    # TODO(synk): host-side list-of-tensors -> pad_sequence/lengths extraction
    # has no in-kernel equivalent; lengths are passed as an array.
    lengths = jnp.array([8, 5], dtype=jnp.int32)                 # (B,)
    x_btd = jax.random.normal(ks[8], (B, T, D), jnp.float32)
    pad_mask = (jnp.arange(T)[None, :] < lengths[:, None]).astype(jnp.float32)
    x_btd = x_btd * pad_mask[:, :, None]                         # zero out padding

    # action_mask: nonzero => mask that action's logit to -inf.
    action_mask = jnp.array([[0, 1, 0, 0],
                             [0, 0, 0, 1]], dtype=jnp.int32)     # (B, A)

    probs = policy_net_forward(x_btd, lengths, action_mask, params)
    probs = jax.block_until_ready(probs)

    ref = reference_forward(x_btd, lengths, action_mask, params)
    ref = jax.block_until_ready(ref)

    assert probs.shape == (B, A)
    assert jnp.allclose(probs, ref, rtol=2e-3, atol=2e-3), (probs, ref)
    # Masked actions must have ~zero probability; rows sum to ~1.
    assert jnp.allclose(jnp.sum(probs, axis=1), 1.0, atol=1e-3)
    print("KERNEL_OK")
</pallas_src>

<mosaic_0001>
module attributes {stable_mosaic.version = 11 : i64} {
  func.func @policy_net_kernel(%arg0: i32, %arg1: i32, %arg2: memref<1x64x4xf32, #tpu.memory_space<vmem>>, %arg3: memref<8x256xf32, #tpu.memory_space<vmem>>, %arg4: memref<38x96xf32, #tpu.memory_space<vmem>>, %arg5: memref<33x160xf32, #tpu.memory_space<vmem>>, %arg6: memref<8x128xf32, #tpu.memory_space<vmem>>, %arg7: memref<8x32xf32, #tpu.memory_space<vmem>>, %arg8: memref<8x32xf32, #tpu.memory_space<vmem>>) attributes {dimension_semantics = [#tpu.dimension_semantics<parallel>, #tpu.dimension_semantics<arbitrary>], iteration_bounds = array<i64: 1, 1>, scalar_prefetch = 0 : i64, scratch_operands = 2 : i64, tpu.core_type = #tpu.core_type<tc>, window_params = [{transform_indices = @transform_0, window_bounds = array<i64: 1, 64, 4>}, {transform_indices = @transform_1, window_bounds = array<i64: 8, 256>}, {pipeline_mode = #tpu.pipeline_mode<synchronous>, transform_indices = @transform_2, window_bounds = array<i64: 38, 96>}, {pipeline_mode = #tpu.pipeline_mode<synchronous>, transform_indices = @transform_3, window_bounds = array<i64: 33, 160>}, {transform_indices = @transform_4, window_bounds = array<i64: 8, 128>}]} {
    %c0_i32 = arith.constant 0 : i32
    %0 = arith.cmpi eq, %arg1, %c0_i32 : i32
    %1 = arith.extui %0 : i1 to i32
    %c0_i32_0 = arith.constant 0 : i32
    %2 = arith.cmpi ne, %1, %c0_i32_0 : i32
    scf.if %2 {
      %cst_42 = arith.constant 0.000000e+00 : f32
      %252 = vector.broadcast %cst_42 : f32 to vector<8x32xf32>
      %c0_43 = arith.constant 0 : index
      %c0_44 = arith.constant 0 : index
      %253 = vector.load %arg7[%c0_43, %c0_44] : memref<8x32xf32, #tpu.memory_space<vmem>>, vector<8x32xf32>
      tpu.vector_store %arg7[%c0_43, %c0_44], %252 {strides = array<i32>} : memref<8x32xf32, #tpu.memory_space<vmem>>, vector<8x32xf32>,
      %cst_45 = arith.constant 0.000000e+00 : f32
      %254 = vector.broadcast %cst_45 : f32 to vector<8x32xf32>
      %c0_46 = arith.constant 0 : index
      %c0_47 = arith.constant 0 : index
      %255 = vector.load %arg8[%c0_46, %c0_47] : memref<8x32xf32, #tpu.memory_space<vmem>>, vector<8x32xf32>
      tpu.vector_store %arg8[%c0_46, %c0_47], %254 {strides = array<i32>} : memref<8x32xf32, #tpu.memory_space<vmem>>, vector<8x32xf32>,
    } else {
    }
    %c0 = arith.constant 0 : index
    %c0_1 = arith.constant 0 : index
    %c0_2 = arith.constant 0 : index
    %3 = vector.load %arg2[%c0, %c0_1, %c0_2] : memref<1x64x4xf32, #tpu.memory_space<vmem>>, vector<1x64x4xf32>
    %4 = vector.shape_cast %3 : vector<1x64x4xf32> to vector<64x4xf32>
    %c0_3 = arith.constant 0 : index
    %c0_4 = arith.constant 0 : index
    %5 = vector.load %arg4[%c0_3, %c0_4] : memref<38x96xf32, #tpu.memory_space<vmem>>, vector<32x96xf32>
    %c32 = arith.constant 32 : index
    %c0_5 = arith.constant 0 : index
    %6 = vector.load %arg4[%c32, %c0_5] : memref<38x96xf32, #tpu.memory_space<vmem>>, vector<4x96xf32>
    %c36 = arith.constant 36 : index
    %c0_6 = arith.constant 0 : index
    %7 = vector.load %arg4[%c36, %c0_6] : memref<38x96xf32, #tpu.memory_space<vmem>>, vector<1x96xf32>
    %c37 = arith.constant 37 : index
    %c64 = arith.constant 64 : index
    %8 = vector.load %arg4[%c37, %c64] : memref<38x96xf32, #tpu.memory_space<vmem>>, vector<1x32xf32>
    %cst = arith.constant dense<0.000000e+00> : vector<64x96xf32>
    %9 = tpu.matmul %4, %6, %cst {dimension_numbers = #tpu.dot_dimension_numbers<[1], [0], [0], [1], [0, 0, 1, 1], [], []>} : vector<64x4xf32>, vector<4x96xf32>, vector<64x96xf32> -> vector<64x96xf32>
    %10 = vector.broadcast %7 : vector<1x96xf32> to vector<64x96xf32>
    %11 = arith.addf %9, %10 : vector<64x96xf32>
    %c0_7 = arith.constant 0 : index
    %c128 = arith.constant 128 : index
    %12 = vector.load %arg3[%c0_7, %c128] : memref<8x256xf32, #tpu.memory_space<vmem>>, vector<8x1xf32>
    %c0_8 = arith.constant 0 : index
    %c0_9 = arith.constant 0 : index
    %13 = vector.load %arg7[%c0_8, %c0_9] : memref<8x32xf32, #tpu.memory_space<vmem>>, vector<8x32xf32>
    %c0_10 = arith.constant 0 : index
    %c0_11 = arith.constant 0 : index
    %14 = vector.load %arg8[%c0_10, %c0_11] : memref<8x32xf32, #tpu.memory_space<vmem>>, vector<8x32xf32>
    %cst_12 = arith.constant dense<0.000000e+00> : vector<8x96xf32>
    %15 = tpu.matmul %13, %5, %cst_12 {dimension_numbers = #tpu.dot_dimension_numbers<[1], [0], [0], [1], [0, 0, 1, 1], [], []>} : vector<8x32xf32>, vector<32x96xf32>, vector<8x96xf32> -> vector<8x96xf32>
    %16 = vector.extract_strided_slice %11 {offsets = [0, 0], sizes = [8, 64], strides = [1, 1]} : vector<64x96xf32> to vector<8x64xf32>
    %17 = vector.extract_strided_slice %15 {offsets = [0, 0], sizes = [8, 64], strides = [1, 1]} : vector<8x96xf32> to vector<8x64xf32>
    %18 = arith.addf %16, %17 : vector<8x64xf32>
    %19 = arith.negf %18 : vector<8x64xf32>
    %20 = math.exp %19 : vector<8x64xf32>
    %cst_13 = arith.constant 1.000000e+00 : f32
    %21 = vector.broadcast %cst_13 : f32 to vector<8x64xf32>
    %22 = arith.addf %21, %20 : vector<8x64xf32>
    %23 = arith.divf %21, %22 : vector<8x64xf32>
    %24 = vector.extract_strided_slice %23 {offsets = [0, 0], sizes = [8, 32], strides = [1, 1]} : vector<8x64xf32> to vector<8x32xf32>
    %25 = vector.extract_strided_slice %23 {offsets = [0, 32], sizes = [8, 32], strides = [1, 1]} : vector<8x64xf32> to vector<8x32xf32>
    %26 = vector.extract_strided_slice %11 {offsets = [0, 64], sizes = [8, 32], strides = [1, 1]} : vector<64x96xf32> to vector<8x32xf32>
    %27 = vector.extract_strided_slice %15 {offsets = [0, 64], sizes = [8, 32], strides = [1, 1]} : vector<8x96xf32> to vector<8x32xf32>
    %28 = vector.broadcast %8 : vector<1x32xf32> to vector<8x32xf32>
    %29 = arith.addf %27, %28 : vector<8x32xf32>
    %30 = arith.mulf %24, %29 : vector<8x32xf32>
    %31 = arith.addf %26, %30 : vector<8x32xf32>
    %32 = math.tanh %31 : vector<8x32xf32>
    %33 = arith.subf %13, %32 : vector<8x32xf32>
    %34 = arith.mulf %25, %33 : vector<8x32xf32>
    %35 = arith.addf %32, %34 : vector<8x32xf32>
    %c8_i32 = arith.constant 8 : i32
    %36 = arith.muli %arg1, %c8_i32 : i32
    %c1_i32 = arith.constant 1 : i32
    %37 = arith.addi %36, %c1_i32 : i32
    %38 = arith.sitofp %37 : i32 to f32
    %39 = vector.broadcast %38 : f32 to vector<8x1xf32>
    %40 = arith.cmpf oeq, %12, %39 : vector<8x1xf32>
    %41 = vector.shape_cast %40 : vector<8x1xi1> to vector<8x1xi1>
    %42 = vector.broadcast %41 : vector<8x1xi1> to vector<8x32xi1>
    %43 = arith.select %42, %35, %14 : vector<8x32xi1>, vector<8x32xf32>
    %cst_14 = arith.constant dense<0.000000e+00> : vector<8x96xf32>
    %44 = tpu.matmul %35, %5, %cst_14 {dimension_numbers = #tpu.dot_dimension_numbers<[1], [0], [0], [1], [0, 0, 1, 1], [], []>} : vector<8x32xf32>, vector<32x96xf32>, vector<8x96xf32> -> vector<8x96xf32>
    %45 = vector.extract_strided_slice %11 {offsets = [8, 0], sizes = [8, 64], strides = [1, 1]} : vector<64x96xf32> to vector<8x64xf32>
    %46 = vector.extract_strided_slice %44 {offsets = [0, 0], sizes = [8, 64], strides = [1, 1]} : vector<8x96xf32> to vector<8x64xf32>
    %47 = arith.addf %45, %46 : vector<8x64xf32>
    %48 = arith.negf %47 : vector<8x64xf32>
    %49 = math.exp %48 : vector<8x64xf32>
    %cst_15 = arith.constant 1.000000e+00 : f32
    %50 = vector.broadcast %cst_15 : f32 to vector<8x64xf32>
    %51 = arith.addf %50, %49 : vector<8x64xf32>
    %52 = arith.divf %50, %51 : vector<8x64xf32>
    %53 = vector.extract_strided_slice %52 {offsets = [0, 0], sizes = [8, 32], strides = [1, 1]} : vector<8x64xf32> to vector<8x32xf32>
    %54 = vector.extract_strided_slice %52 {offsets = [0, 32], sizes = [8, 32], strides = [1, 1]} : vector<8x64xf32> to vector<8x32xf32>
    %55 = vector.extract_strided_slice %11 {offsets = [8, 64], sizes = [8, 32], strides = [1, 1]} : vector<64x96xf32> to vector<8x32xf32>
    %56 = vector.extract_strided_slice %44 {offsets = [0, 64], sizes = [8, 32], strides = [1, 1]} : vector<8x96xf32> to vector<8x32xf32>
    %57 = vector.broadcast %8 : vector<1x32xf32> to vector<8x32xf32>
    %58 = arith.addf %56, %57 : vector<8x32xf32>
    %59 = arith.mulf %53, %58 : vector<8x32xf32>
    %60 = arith.addf %55, %59 : vector<8x32xf32>
    %61 = math.tanh %60 : vector<8x32xf32>
    %62 = arith.subf %35, %61 : vector<8x32xf32>
    %63 = arith.mulf %54, %62 : vector<8x32xf32>
    %64 = arith.addf %61, %63 : vector<8x32xf32>
    %c8_i32_16 = arith.constant 8 : i32
    %65 = arith.muli %arg1, %c8_i32_16 : i32
    %c2_i32 = arith.constant 2 : i32
    %66 = arith.addi %65, %c2_i32 : i32
    %67 = arith.sitofp %66 : i32 to f32
    %68 = vector.broadcast %67 : f32 to vector<8x1xf32>
    %69 = arith.cmpf oeq, %12, %68 : vector<8x1xf32>
    %70 = vector.shape_cast %69 : vector<8x1xi1> to vector<8x1xi1>
    %71 = vector.broadcast %70 : vector<8x1xi1> to vector<8x32xi1>
    %72 = arith.select %71, %64, %43 : vector<8x32xi1>, vector<8x32xf32>
    %cst_17 = arith.constant dense<0.000000e+00> : vector<8x96xf32>
    %73 = tpu.matmul %64, %5, %cst_17 {dimension_numbers = #tpu.dot_dimension_numbers<[1], [0], [0], [1], [0, 0, 1, 1], [], []>} : vector<8x32xf32>, vector<32x96xf32>, vector<8x96xf32> -> vector<8x96xf32>
    %74 = vector.extract_strided_slice %11 {offsets = [16, 0], sizes = [8, 64], strides = [1, 1]} : vector<64x96xf32> to vector<8x64xf32>
    %75 = vector.extract_strided_slice %73 {offsets = [0, 0], sizes = [8, 64], strides = [1, 1]} : vector<8x96xf32> to vector<8x64xf32>
    %76 = arith.addf %74, %75 : vector<8x64xf32>
    %77 = arith.negf %76 : vector<8x64xf32>
    %78 = math.exp %77 : vector<8x64xf32>
    %cst_18 = arith.constant 1.000000e+00 : f32
    %79 = vector.broadcast %cst_18 : f32 to vector<8x64xf32>
    %80 = arith.addf %79, %78 : vector<8x64xf32>
    %81 = arith.divf %79, %80 : vector<8x64xf32>
    %82 = vector.extract_strided_slice %81 {offsets = [0, 0], sizes = [8, 32], strides = [1, 1]} : vector<8x64xf32> to vector<8x32xf32>
    %83 = vector.extract_strided_slice %81 {offsets = [0, 32], sizes = [8, 32], strides = [1, 1]} : vector<8x64xf32> to vector<8x32xf32>
    %84 = vector.extract_strided_slice %11 {offsets = [16, 64], sizes = [8, 32], strides = [1, 1]} : vector<64x96xf32> to vector<8x32xf32>
    %85 = vector.extract_strided_slice %73 {offsets = [0, 64], sizes = [8, 32], strides = [1, 1]} : vector<8x96xf32> to vector<8x32xf32>
    %86 = vector.broadcast %8 : vector<1x32xf32> to vector<8x32xf32>
    %87 = arith.addf %85, %86 : vector<8x32xf32>
    %88 = arith.mulf %82, %87 : vector<8x32xf32>
    %89 = arith.addf %84, %88 : vector<8x32xf32>
    %90 = math.tanh %89 : vector<8x32xf32>
    %91 = arith.subf %64, %90 : vector<8x32xf32>
    %92 = arith.mulf %83, %91 : vector<8x32xf32>
    %93 = arith.addf %90, %92 : vector<8x32xf32>
    %c8_i32_19 = arith.constant 8 : i32
    %94 = arith.muli %arg1, %c8_i32_19 : i32
    %c3_i32 = arith.constant 3 : i32
    %95 = arith.addi %94, %c3_i32 : i32
    %96 = arith.sitofp %95 : i32 to f32
    %97 = vector.broadcast %96 : f32 to vector<8x1xf32>
    %98 = arith.cmpf oeq, %12, %97 : vector<8x1xf32>
    %99 = vector.shape_cast %98 : vector<8x1xi1> to vector<8x1xi1>
    %100 = vector.broadcast %99 : vector<8x1xi1> to vector<8x32xi1>
    %101 = arith.select %100, %93, %72 : vector<8x32xi1>, vector<8x32xf32>
    %cst_20 = arith.constant dense<0.000000e+00> : vector<8x96xf32>
    %102 = tpu.matmul %93, %5, %cst_20 {dimension_numbers = #tpu.dot_dimension_numbers<[1], [0], [0], [1], [0, 0, 1, 1], [], []>} : vector<8x32xf32>, vector<32x96xf32>, vector<8x96xf32> -> vector<8x96xf32>
    %103 = vector.extract_strided_slice %11 {offsets = [24, 0], sizes = [8, 64], strides = [1, 1]} : vector<64x96xf32> to vector<8x64xf32>
    %104 = vector.extract_strided_slice %102 {offsets = [0, 0], sizes = [8, 64], strides = [1, 1]} : vector<8x96xf32> to vector<8x64xf32>
    %105 = arith.addf %103, %104 : vector<8x64xf32>
    %106 = arith.negf %105 : vector<8x64xf32>
    %107 = math.exp %106 : vector<8x64xf32>
    %cst_21 = arith.constant 1.000000e+00 : f32
    %108 = vector.broadcast %cst_21 : f32 to vector<8x64xf32>
    %109 = arith.addf %108, %107 : vector<8x64xf32>
    %110 = arith.divf %108, %109 : vector<8x64xf32>
    %111 = vector.extract_strided_slice %110 {offsets = [0, 0], sizes = [8, 32], strides = [1, 1]} : vector<8x64xf32> to vector<8x32xf32>
    %112 = vector.extract_strided_slice %110 {offsets = [0, 32], sizes = [8, 32], strides = [1, 1]} : vector<8x64xf32> to vector<8x32xf32>
    %113 = vector.extract_strided_slice %11 {offsets = [24, 64], sizes = [8, 32], strides = [1, 1]} : vector<64x96xf32> to vector<8x32xf32>
    %114 = vector.extract_strided_slice %102 {offsets = [0, 64], sizes = [8, 32], strides = [1, 1]} : vector<8x96xf32> to vector<8x32xf32>
    %115 = vector.broadcast %8 : vector<1x32xf32> to vector<8x32xf32>
    %116 = arith.addf %114, %115 : vector<8x32xf32>
    %117 = arith.mulf %111, %116 : vector<8x32xf32>
    %118 = arith.addf %113, %117 : vector<8x32xf32>
    %119 = math.tanh %118 : vector<8x32xf32>
    %120 = arith.subf %93, %119 : vector<8x32xf32>
    %121 = arith.mulf %112, %120 : vector<8x32xf32>
    %122 = arith.addf %119, %121 : vector<8x32xf32>
    %c8_i32_22 = arith.constant 8 : i32
    %123 = arith.muli %arg1, %c8_i32_22 : i32
    %c4_i32 = arith.constant 4 : i32
    %124 = arith.addi %123, %c4_i32 : i32
    %125 = arith.sitofp %124 : i32 to f32
    %126 = vector.broadcast %125 : f32 to vector<8x1xf32>
    %127 = arith.cmpf oeq, %12, %126 : vector<8x1xf32>
    %128 = vector.shape_cast %127 : vector<8x1xi1> to vector<8x1xi1>
    %129 = vector.broadcast %128 : vector<8x1xi1> to vector<8x32xi1>
    %130 = arith.select %129, %122, %101 : vector<8x32xi1>, vector<8x32xf32>
    %cst_23 = arith.constant dense<0.000000e+00> : vector<8x96xf32>
    %131 = tpu.matmul %122, %5, %cst_23 {dimension_numbers = #tpu.dot_dimension_numbers<[1], [0], [0], [1], [0, 0, 1, 1], [], []>} : vector<8x32xf32>, vector<32x96xf32>, vector<8x96xf32> -> vector<8x96xf32>
    %132 = vector.extract_strided_slice %11 {offsets = [32, 0], sizes = [8, 64], strides = [1, 1]} : vector<64x96xf32> to vector<8x64xf32>
    %133 = vector.extract_strided_slice %131 {offsets = [0, 0], sizes = [8, 64], strides = [1, 1]} : vector<8x96xf32> to vector<8x64xf32>
    %134 = arith.addf %132, %133 : vector<8x64xf32>
    %135 = arith.negf %134 : vector<8x64xf32>
    %136 = math.exp %135 : vector<8x64xf32>
    %cst_24 = arith.constant 1.000000e+00 : f32
    %137 = vector.broadcast %cst_24 : f32 to vector<8x64xf32>
    %138 = arith.addf %137, %136 : vector<8x64xf32>
    %139 = arith.divf %137, %138 : vector<8x64xf32>
    %140 = vector.extract_strided_slice %139 {offsets = [0, 0], sizes = [8, 32], strides = [1, 1]} : vector<8x64xf32> to vector<8x32xf32>
    %141 = vector.extract_strided_slice %139 {offsets = [0, 32], sizes = [8, 32], strides = [1, 1]} : vector<8x64xf32> to vector<8x32xf32>
    %142 = vector.extract_strided_slice %11 {offsets = [32, 64], sizes = [8, 32], strides = [1, 1]} : vector<64x96xf32> to vector<8x32xf32>
    %143 = vector.extract_strided_slice %131 {offsets = [0, 64], sizes = [8, 32], strides = [1, 1]} : vector<8x96xf32> to vector<8x32xf32>
    %144 = vector.broadcast %8 : vector<1x32xf32> to vector<8x32xf32>
    %145 = arith.addf %143, %144 : vector<8x32xf32>
    %146 = arith.mulf %140, %145 : vector<8x32xf32>
    %147 = arith.addf %142, %146 : vector<8x32xf32>
    %148 = math.tanh %147 : vector<8x32xf32>
    %149 = arith.subf %122, %148 : vector<8x32xf32>
    %150 = arith.mulf %141, %149 : vector<8x32xf32>
    %151 = arith.addf %148, %150 : vector<8x32xf32>
    %c8_i32_25 = arith.constant 8 : i32
    %152 = arith.muli %arg1, %c8_i32_25 : i32
    %c5_i32 = arith.constant 5 : i32
    %153 = arith.addi %152, %c5_i32 : i32
    %154 = arith.sitofp %153 : i32 to f32
    %155 = vector.broadcast %154 : f32 to vector<8x1xf32>
    %156 = arith.cmpf oeq, %12, %155 : vector<8x1xf32>
    %157 = vector.shape_cast %156 : vector<8x1xi1> to vector<8x1xi1>
    %158 = vector.broadcast %157 : vector<8x1xi1> to vector<8x32xi1>
    %159 = arith.select %158, %151, %130 : vector<8x32xi1>, vector<8x32xf32>
    %cst_26 = arith.constant dense<0.000000e+00> : vector<8x96xf32>
    %160 = tpu.matmul %151, %5, %cst_26 {dimension_numbers = #tpu.dot_dimension_numbers<[1], [0], [0], [1], [0, 0, 1, 1], [], []>} : vector<8x32xf32>, vector<32x96xf32>, vector<8x96xf32> -> vector<8x96xf32>
    %161 = vector.extract_strided_slice %11 {offsets = [40, 0], sizes = [8, 64], strides = [1, 1]} : vector<64x96xf32> to vector<8x64xf32>
    %162 = vector.extract_strided_slice %160 {offsets = [0, 0], sizes = [8, 64], strides = [1, 1]} : vector<8x96xf32> to vector<8x64xf32>
    %163 = arith.addf %161, %162 : vector<8x64xf32>
    %164 = arith.negf %163 : vector<8x64xf32>
    %165 = math.exp %164 : vector<8x64xf32>
    %cst_27 = arith.constant 1.000000e+00 : f32
    %166 = vector.broadcast %cst_27 : f32 to vector<8x64xf32>
    %167 = arith.addf %166, %165 : vector<8x64xf32>
    %168 = arith.divf %166, %167 : vector<8x64xf32>
    %169 = vector.extract_strided_slice %168 {offsets = [0, 0], sizes = [8, 32], strides = [1, 1]} : vector<8x64xf32> to vector<8x32xf32>
    %170 = vector.extract_strided_slice %168 {offsets = [0, 32], sizes = [8, 32], strides = [1, 1]} : vector<8x64xf32> to vector<8x32xf32>
    %171 = vector.extract_strided_slice %11 {offsets = [40, 64], sizes = [8, 32], strides = [1, 1]} : vector<64x96xf32> to vector<8x32xf32>
    %172 = vector.extract_strided_slice %160 {offsets = [0, 64], sizes = [8, 32], strides = [1, 1]} : vector<8x96xf32> to vector<8x32xf32>
    %173 = vector.broadcast %8 : vector<1x32xf32> to vector<8x32xf32>
    %174 = arith.addf %172, %173 : vector<8x32xf32>
    %175 = arith.mulf %169, %174 : vector<8x32xf32>
    %176 = arith.addf %171, %175 : vector<8x32xf32>
    %177 = math.tanh %176 : vector<8x32xf32>
    %178 = arith.subf %151, %177 : vector<8x32xf32>
    %179 = arith.mulf %170, %178 : vector<8x32xf32>
    %180 = arith.addf %177, %179 : vector<8x32xf32>
    %c8_i32_28 = arith.constant 8 : i32
    %181 = arith.muli %arg1, %c8_i32_28 : i32
    %c6_i32 = arith.constant 6 : i32
    %182 = arith.addi %181, %c6_i32 : i32
    %183 = arith.sitofp %182 : i32 to f32
    %184 = vector.broadcast %183 : f32 to vector<8x1xf32>
    %185 = arith.cmpf oeq, %12, %184 : vector<8x1xf32>
    %186 = vector.shape_cast %185 : vector<8x1xi1> to vector<8x1xi1>
    %187 = vector.broadcast %186 : vector<8x1xi1> to vector<8x32xi1>
    %188 = arith.select %187, %180, %159 : vector<8x32xi1>, vector<8x32xf32>
    %cst_29 = arith.constant dense<0.000000e+00> : vector<8x96xf32>
    %189 = tpu.matmul %180, %5, %cst_29 {dimension_numbers = #tpu.dot_dimension_numbers<[1], [0], [0], [1], [0, 0, 1, 1], [], []>} : vector<8x32xf32>, vector<32x96xf32>, vector<8x96xf32> -> vector<8x96xf32>
    %190 = vector.extract_strided_slice %11 {offsets = [48, 0], sizes = [8, 64], strides = [1, 1]} : vector<64x96xf32> to vector<8x64xf32>
    %191 = vector.extract_strided_slice %189 {offsets = [0, 0], sizes = [8, 64], strides = [1, 1]} : vector<8x96xf32> to vector<8x64xf32>
    %192 = arith.addf %190, %191 : vector<8x64xf32>
    %193 = arith.negf %192 : vector<8x64xf32>
    %194 = math.exp %193 : vector<8x64xf32>
    %cst_30 = arith.constant 1.000000e+00 : f32
    %195 = vector.broadcast %cst_30 : f32 to vector<8x64xf32>
    %196 = arith.addf %195, %194 : vector<8x64xf32>
    %197 = arith.divf %195, %196 : vector<8x64xf32>
    %198 = vector.extract_strided_slice %197 {offsets = [0, 0], sizes = [8, 32], strides = [1, 1]} : vector<8x64xf32> to vector<8x32xf32>
    %199 = vector.extract_strided_slice %197 {offsets = [0, 32], sizes = [8, 32], strides = [1, 1]} : vector<8x64xf32> to vector<8x32xf32>
    %200 = vector.extract_strided_slice %11 {offsets = [48, 64], sizes = [8, 32], strides = [1, 1]} : vector<64x96xf32> to vector<8x32xf32>
    %201 = vector.extract_strided_slice %189 {offsets = [0, 64], sizes = [8, 32], strides = [1, 1]} : vector<8x96xf32> to vector<8x32xf32>
    %202 = vector.broadcast %8 : vector<1x32xf32> to vector<8x32xf32>
    %203 = arith.addf %201, %202 : vector<8x32xf32>
    %204 = arith.mulf %198, %203 : vector<8x32xf32>
    %205 = arith.addf %200, %204 : vector<8x32xf32>
    %206 = math.tanh %205 : vector<8x32xf32>
    %207 = arith.subf %180, %206 : vector<8x32xf32>
    %208 = arith.mulf %199, %207 : vector<8x32xf32>
    %209 = arith.addf %206, %208 : vector<8x32xf32>
    %c8_i32_31 = arith.constant 8 : i32
    %210 = arith.muli %arg1, %c8_i32_31 : i32
    %c7_i32 = arith.constant 7 : i32
    %211 = arith.addi %210, %c7_i32 : i32
    %212 = arith.sitofp %211 : i32 to f32
    %213 = vector.broadcast %212 : f32 to vector<8x1xf32>
    %214 = arith.cmpf oeq, %12, %213 : vector<8x1xf32>
    %215 = vector.shape_cast %214 : vector<8x1xi1> to vector<8x1xi1>
    %216 = vector.broadcast %215 : vector<8x1xi1> to vector<8x32xi1>
    %217 = arith.select %216, %209, %188 : vector<8x32xi1>, vector<8x32xf32>
    %cst_32 = arith.constant dense<0.000000e+00> : vector<8x96xf32>
    %218 = tpu.matmul %209, %5, %cst_32 {dimension_numbers = #tpu.dot_dimension_numbers<[1], [0], [0], [1], [0, 0, 1, 1], [], []>} : vector<8x32xf32>, vector<32x96xf32>, vector<8x96xf32> -> vector<8x96xf32>
    %219 = vector.extract_strided_slice %11 {offsets = [56, 0], sizes = [8, 64], strides = [1, 1]} : vector<64x96xf32> to vector<8x64xf32>
    %220 = vector.extract_strided_slice %218 {offsets = [0, 0], sizes = [8, 64], strides = [1, 1]} : vector<8x96xf32> to vector<8x64xf32>
    %221 = arith.addf %219, %220 : vector<8x64xf32>
    %222 = arith.negf %221 : vector<8x64xf32>
    %223 = math.exp %222 : vector<8x64xf32>
    %cst_33 = arith.constant 1.000000e+00 : f32
    %224 = vector.broadcast %cst_33 : f32 to vector<8x64xf32>
    %225 = arith.addf %224, %223 : vector<8x64xf32>
    %226 = arith.divf %224, %225 : vector<8x64xf32>
    %227 = vector.extract_strided_slice %226 {offsets = [0, 0], sizes = [8, 32], strides = [1, 1]} : vector<8x64xf32> to vector<8x32xf32>
    %228 = vector.extract_strided_slice %226 {offsets = [0, 32], sizes = [8, 32], strides = [1, 1]} : vector<8x64xf32> to vector<8x32xf32>
    %229 = vector.extract_strided_slice %11 {offsets = [56, 64], sizes = [8, 32], strides = [1, 1]} : vector<64x96xf32> to vector<8x32xf32>
    %230 = vector.extract_strided_slice %218 {offsets = [0, 64], sizes = [8, 32], strides = [1, 1]} : vector<8x96xf32> to vector<8x32xf32>
    %231 = vector.broadcast %8 : vector<1x32xf32> to vector<8x32xf32>
    %232 = arith.addf %230, %231 : vector<8x32xf32>
    %233 = arith.mulf %227, %232 : vector<8x32xf32>
    %234 = arith.addf %229, %233 : vector<8x32xf32>
    %235 = math.tanh %234 : vector<8x32xf32>
    %236 = arith.subf %209, %235 : vector<8x32xf32>
    %237 = arith.mulf %228, %236 : vector<8x32xf32>
    %238 = arith.addf %235, %237 : vector<8x32xf32>
    %c8_i32_34 = arith.constant 8 : i32
    %239 = arith.muli %arg1, %c8_i32_34 : i32
    %c8_i32_35 = arith.constant 8 : i32
    %240 = arith.addi %239, %c8_i32_35 : i32
    %241 = arith.sitofp %240 : i32 to f32
    %242 = vector.broadcast %241 : f32 to vector<8x1xf32>
    %243 = arith.cmpf oeq, %12, %242 : vector<8x1xf32>
    %244 = vector.shape_cast %243 : vector<8x1xi1> to vector<8x1xi1>
    %245 = vector.broadcast %244 : vector<8x1xi1> to vector<8x32xi1>
    %246 = arith.select %245, %238, %217 : vector<8x32xi1>, vector<8x32xf32>
    %c0_36 = arith.constant 0 : index
    %c0_37 = arith.constant 0 : index
    %247 = vector.load %arg7[%c0_36, %c0_37] : memref<8x32xf32, #tpu.memory_space<vmem>>, vector<8x32xf32>
    tpu.vector_store %arg7[%c0_36, %c0_37], %238 {strides = array<i32>} : memref<8x32xf32, #tpu.memory_space<vmem>>, vector<8x32xf32>,
    %c0_38 = arith.constant 0 : index
    %c0_39 = arith.constant 0 : index
    %248 = vector.load %arg8[%c0_38, %c0_39] : memref<8x32xf32, #tpu.memory_space<vmem>>, vector<8x32xf32>
    tpu.vector_store %arg8[%c0_38, %c0_39], %246 {strides = array<i32>} : memref<8x32xf32, #tpu.memory_space<vmem>>, vector<8x32xf32>,
    %c0_i32_40 = arith.constant 0 : i32
    %249 = arith.cmpi eq, %arg1, %c0_i32_40 : i32
    %250 = arith.extui %249 : i1 to i32
    %c0_i32_41 = arith.constant 0 : i32
    %251 = arith.cmpi ne, %250, %c0_i32_41 : i32
    scf.if %251 {
      %c0_42 = arith.constant 0 : index
      %c0_43 = arith.constant 0 : index
      %252 = vector.load %arg8[%c0_42, %c0_43] : memref<8x32xf32, #tpu.memory_space<vmem>>, vector<8x32xf32>
      %c0_44 = arith.constant 0 : index
      %c128_45 = arith.constant 128 : index
      %253 = vector.load %arg5[%c0_44, %c128_45] : memref<33x160xf32, #tpu.memory_space<vmem>>, vector<32x32xf32>
      %c32_46 = arith.constant 32 : index
      %c128_47 = arith.constant 128 : index
      %254 = vector.load %arg5[%c32_46, %c128_47] : memref<33x160xf32, #tpu.memory_space<vmem>>, vector<1x32xf32>
      %cst_48 = arith.constant dense<0.000000e+00> : vector<8x32xf32>
      %255 = tpu.matmul %252, %253, %cst_48 {dimension_numbers = #tpu.dot_dimension_numbers<[1], [0], [0], [1], [0, 0, 1, 1], [], []>} : vector<8x32xf32>, vector<32x32xf32>, vector<8x32xf32> -> vector<8x32xf32>
      %256 = vector.broadcast %254 : vector<1x32xf32> to vector<8x32xf32>
      %257 = arith.addf %255, %256 : vector<8x32xf32>
      %cst_49 = arith.constant 0.000000e+00 : f32
      %258 = vector.broadcast %cst_49 : f32 to vector<8x32xf32>
      %259 = arith.maximumf %257, %258 : vector<8x32xf32>
      %c0_50 = arith.constant 0 : index
      %c0_51 = arith.constant 0 : index
      %260 = vector.load %arg5[%c0_50, %c0_51] : memref<33x160xf32, #tpu.memory_space<vmem>>, vector<32x128xf32>
      %c32_52 = arith.constant 32 : index
      %c0_53 = arith.constant 0 : index
      %261 = vector.load %arg5[%c32_52, %c0_53] : memref<33x160xf32, #tpu.memory_space<vmem>>, vector<1x128xf32>
      %cst_54 = arith.constant dense<0.000000e+00> : vector<8x128xf32>
      %262 = tpu.matmul %259, %260, %cst_54 {dimension_numbers = #tpu.dot_dimension_numbers<[1], [0], [0], [1], [0, 0, 1, 1], [], []>} : vector<8x32xf32>, vector<32x128xf32>, vector<8x128xf32> -> vector<8x128xf32>
      %263 = vector.broadcast %261 : vector<1x128xf32> to vector<8x128xf32>
      %264 = arith.addf %262, %263 : vector<8x128xf32>
      %c0_55 = arith.constant 0 : index
      %c0_56 = arith.constant 0 : index
      %265 = vector.load %arg3[%c0_55, %c0_56] : memref<8x256xf32, #tpu.memory_space<vmem>>, vector<8x128xf32>
      %266 = arith.addf %264, %265 : vector<8x128xf32>
      %cst_57 = arith.constant dense<0xFF800000> : vector<8xf32>
      %267 = vector.multi_reduction <maximumf>, %266, %cst_57 [1] : vector<8x128xf32> to vector<8xf32>
      %268 = vector.shape_cast %267 : vector<8xf32> to vector<8x1xf32>
      %269 = vector.broadcast %268 : vector<8x1xf32> to vector<8x128xf32>
      %270 = arith.subf %266, %269 : vector<8x128xf32>
      %271 = math.exp %270 : vector<8x128xf32>
      %cst_58 = arith.constant dense<0.000000e+00> : vector<8xf32>
      %272 = vector.multi_reduction <add>, %271, %cst_58 [1] : vector<8x128xf32> to vector<8xf32>
      %273 = vector.shape_cast %272 : vector<8xf32> to vector<8x1xf32>
      %274 = tpu.reciprocal %273 : vector<8x1xf32> -> vector<8x1xf32>
      %275 = vector.broadcast %274 : vector<8x1xf32> to vector<8x128xf32>
      %276 = arith.mulf %271, %275 : vector<8x128xf32>
      %c0_59 = arith.constant 0 : index
      %c0_60 = arith.constant 0 : index
      %277 = vector.load %arg6[%c0_59, %c0_60] : memref<8x128xf32, #tpu.memory_space<vmem>>, vector<8x128xf32>
      tpu.vector_store %arg6[%c0_59, %c0_60], %276 {strides = array<i32>} : memref<8x128xf32, #tpu.memory_space<vmem>>, vector<8x128xf32>,
    } else {
    }
    return
  }
  func.func @transform_0(%arg0: i32, %arg1: i32) -> (i32, i32, i32) {
    %c0_i32 = arith.constant 0 : i32
    %c0_i32_0 = arith.constant 0 : i32
    return %arg0, %arg1, %c0_i32 : i32, i32, i32
  }
  func.func @transform_1(%arg0: i32, %arg1: i32) -> (i32, i32) {
    %c0_i32 = arith.constant 0 : i32
    %c0_i32_0 = arith.constant 0 : i32
    return %arg0, %c0_i32 : i32, i32
  }
  func.func @transform_2(%arg0: i32, %arg1: i32) -> (i32, i32) {
    %c0_i32 = arith.constant 0 : i32
    %c0_i32_0 = arith.constant 0 : i32
    %c0_i32_1 = arith.constant 0 : i32
    return %c0_i32, %c0_i32_0 : i32, i32
  }
  func.func @transform_3(%arg0: i32, %arg1: i32) -> (i32, i32) {
    %c0_i32 = arith.constant 0 : i32
    %c0_i32_0 = arith.constant 0 : i32
    %c0_i32_1 = arith.constant 0 : i32
    return %c0_i32, %c0_i32_0 : i32, i32
  }
  func.func @transform_4(%arg0: i32, %arg1: i32) -> (i32, i32) {
    %c0_i32 = arith.constant 0 : i32
    %c0_i32_0 = arith.constant 0 : i32
    return %arg0, %c0_i32 : i32, i32
  }
}

</mosaic_0001>

<bundles_post_ra>
// kernel: tpu_custom_call.1
= control target key start
LH: loop header
LB: loop body
LE: loop exit
PB: predicated region body
PF: predicated region fallthrough
CT: control target
= control target key end

     0   :  { %9 = vsyncpa [#allocation5], 0  ;;  %s1283_s0 = inlined_call_operand.vmem [shape: f32[1,64,4], index: 0, kind: input, shape index: {}]   ;;  %s1284_s1 = inlined_call_operand.vmem [shape: f32[8,256], index: 1, kind: input, shape index: {}]   ;;  %s1285_s2 = inlined_call_operand.vmem [shape: f32[38,96], index: 2, kind: input, shape index: {}]   ;;  %s1286_s3 = inlined_call_operand.hbm [shape: f32[33,160], index: 3, kind: input, shape index: {}]   ;;  %s1287_s4 = inlined_call_operand.hbm [shape: f32[8,128], index: 4, kind: output, shape index: {}]  }
   0x1   :  { %10 = vsyncpa [#allocation6], 0  ;;  %s21_s17 = sshll.u32 %s1286_s3, 4  ;;  %s1023_s18 = smov [#allocation4]   ;;  %s22_s17 = int_to_ptr.hbm [resolvable:$true] %s21_s17 }
   0x2   :  { %s23_s19 = sshll.u32 %s1023_s18, 4  ;;  %s1024_s20 = smov 256   ;;  %s24_s19 = int_to_ptr.vmem [resolvable:$true] %s23_s19 }
   0x3   :  { %s1025_s21 = smov 16  }
   0x4   :  { %29 = dma.hbm_to_vmem [thread:$0]  %s22_s17, 1280, %s24_s19, [#allocation5], %s1024_s20, %s1024_s20, %s1025_s21  }
   0x5   :  { %1019 = dma.done.wait [#allocation5], 1280  }
   0x6   :  { %1020 = vsyncadd [#allocation5], 4294966016  ;;  %vm38_vm0 = vcmask 261120   ;;  %v1026_v0 = vmov 0.0   ;;  %vm82_vm1 = vcmask 1043456   ;;  %vm57_vm2 = vcmask 31744  }
   0x7   :  { %39 = vst.msk [vmem:[#allocation2] sm:$0xff] %vm38_vm0, %v1026_v0  ;;  %v1065_v1 = vld [vmem:[%s1285_s2 + $0x18] sm:$0xff]  ;;  %v1070_v2 = vld [vmem:[%s1285_s2 + $0x10] sm:$0xff]  ;;  %v53_v3 = vld [vmem:[%s1285_s2 + $0x20] sm:$0xf]  ;;  %s1027_s9 = smov 64  }
   0x8   :  { %40 = vst.msk [vmem:[#allocation3] sm:$0xff] %vm38_vm0, %v1026_v0  ;;  %146 = vmatpush.msra.mxu1 %v1065_v1  ;;  %876 = vmatpush.msk.msra.mxu0 %vm82_vm1, %v53_v3  ;;  %v41_v4 = vld [vmem:[%s1283_s0] sm:$0xff]  ;;  %v1082_v5 = vld [vmem:[%s1285_s2 + $0x8] sm:$0xff]  ;;  %s1029_s16 = smov 96   ;;  %s866_s6 = sshll.u32 %s1287_s4, 4  ;;  %s867_s6 = int_to_ptr.hbm [resolvable:$true] %s866_s6 }
   0x9   :  { %877 = vmatmul.msk.f32.vlgmr.msra.gmra.mxu0 %vm57_vm2, %v41_v4  ;;  %903 = vmatpush.msk.msra.mxu2 %vm82_vm1, %v53_v3  ;;  %v1090_v6 = vld [vmem:[%s1285_s2] sm:$0xff]  ;;  %v46_v37 = vld [vmem:[%s1283_s0 + $0x28] sm:$0xff] }
   0xa   :  { %147 = vmatpush.msra.mxu1 %v1070_v2  ;;  %904 = vmatpush.msk.msra.mxu3 %vm82_vm1, %v53_v3  ;;  %v1113_v8 = vld [vmem:[%s1285_s2 + $0x25] ss:$0 sm:$0xff]  ;;  %v1120_v11 = vld [vmem:[%s1285_s2 + $0x24] ss:$0 sm:$0xff]  ;;  %s1028_s2 = smov 32   ;;  %v42_v40 = vld [vmem:[%s1283_s0 + $0x8] sm:$0xff] }
   0xb   :  { %234 = vmatpush.msrb.mxu2 %v1065_v1 }
   0xc   :  { %148 = vmatpush.msra.mxu1 %v1082_v5  ;;  %312 = vmatpush.msrb.mxu3 %v1065_v1 }
   0xd   :  { %235 = vmatpush.msrb.mxu2 %v1070_v2 }
   0xe   :  { %v128_v7 = vld [vmem:[#allocation2] sm:$0xff]  ;;  %149 = vmatpush.msra.mxu1 %v1090_v6  ;;  %313 = vmatpush.msrb.mxu3 %v1070_v2 }
   0xf   :  { %236 = vmatpush.msrb.mxu2 %v1082_v5  ;;  %885 = vmatmul.msk.f32.vlgmr.msra.gmra.mxu1 %vm38_vm0, %v128_v7 }
  0x10   :  { %390 = vmatpush.msrb.mxu1 %v1065_v1  ;;  %314 = vmatpush.msrb.mxu3 %v1082_v5 }
  0x11   :  { %237 = vmatpush.msrb.mxu2 %v1090_v6  ;;  %878 = vmatmul.msk.f32.gmra.mxu0 %vm57_vm2, %v42_v40 }
  0x12   :  { %391 = vmatpush.msrb.mxu1 %v1070_v2  ;;  %315 = vmatpush.msrb.mxu3 %v1090_v6 }
  0x13   :  { %882 = vmatmul.msk.f32.vlgmr.msra.gmra.mxu2 %vm57_vm2, %v46_v37 }
  0x14   :  { %392 = vmatpush.msrb.mxu1 %v1082_v5  ;;  %468 = vmatpush.msra.mxu2 %v1065_v1 }
  0x16   :  { %393 = vmatpush.msrb.mxu1 %v1090_v6  ;;  %469 = vmatpush.msra.mxu2 %v1070_v2 }
  0x18   :  { %624 = vmatpush.msra.mxu1 %v1065_v1  ;;  %470 = vmatpush.msra.mxu2 %v1082_v5 }
  0x1a   :  { %625 = vmatpush.msra.mxu1 %v1070_v2  ;;  %471 = vmatpush.msra.mxu2 %v1090_v6 }
  0x1c   :  { %626 = vmatpush.msra.mxu1 %v1082_v5 }
  0x1e   :  { %627 = vmatpush.msra.mxu1 %v1090_v6 }
  0x86   :  { %v103_v12 = vpop.f32.mrf.mxu0 }
  0x87   :  { %v104_v13 = vadd.f32 %v1120_v11, %v103_v12  ;;  %v48_v12 = vld [vmem:[%s1283_s0 + $0x38] sm:$0xff] }
  0x8c   :  { %v151_v9 = vpop.f32.mrf.mxu1 }
  0x8d   :  { %v175_v10 = vadd.f32 %v1113_v8, %v151_v9  ;;  %v154_v14 = vadd.f32 %v151_v9, %v104_v13 }
  0x8e   :  { %v106_v45 = vpop.f32.mrf.mxu0 }
  0x8f   :  { %177 = vrot.lane.b32.xlu0 %v175_v10, %s1027_s9  ;;  %v886_v15 = vmul.f32 -1.442695, %v154_v14  ;;  %v107_v46 = vadd.f32 %v1120_v11, %v106_v45  ;;  %v47_v10 = vld [vmem:[%s1283_s0 + $0x30] sm:$0xff] }
  0x90   :  { %883 = vmatmul.msk.f32.vlgmr.msra.gmra.mxu3 %vm57_vm2, %v47_v10 }
  0x91   :  { %919 = vpow2.f32 %v886_v15  ;;  %546 = vmatpush.msra.mxu3 %v1065_v1 }
  0x93   :  { %547 = vmatpush.msra.mxu3 %v1070_v2 }
  0x95   :  { %548 = vmatpush.msra.mxu3 %v1082_v5 }
  0x96   :  { %v1148_v42 = vpop.f32.mrf.mxu2 }
  0x97   :  { %v920_v16 = vpop.eup %919  ;;  %549 = vmatpush.msra.mxu3 %v1090_v6 }
  0x98   :  { %v158_v17 = vadd.f32 1.0, %v920_v16  ;;  %884 = vmatmul.msk.f32.gmra.mxu3 %vm57_vm2, %v48_v12 }
  0x9a   :  { %921 = vrcp.f32 %v158_v17  ;;  %v170_v23 = vand.u32 2147483648, %v158_v17  ;;  %vm164_vm4 = vweird.f32 %v158_v17  ;;  %v168_v24 = vand.u32 2147483647, %v158_v17 }
  0x9c   :  { %v171_v26 = vor.u32 1.1754944e-38, %v170_v23  ;;  %vm169_vm6 = vcmp.eq.f32.partialorder %v168_v24, 8.507059e+37 }
  0xa0   :  { %v922_v18 = vpop.eup %921 }
  0xa1   :  { %v160_v19 = vmul.f32 %v922_v18, %v158_v17  ;;  %vm165_vm3 = vweird.f32 %v922_v18 }
  0xa2   :  { %vm166_vm5 = vmor %vm164_vm4, %vm165_vm3 }
  0xa3   :  { %v161_v20 = vsub.f32 1.0, %v160_v19 }
  0xa5   :  { %v162_v21 = vmul.f32 %v922_v18, %v161_v20 }
  0xa7   :  { %v163_v22 = vadd.f32 %v922_v18, %v162_v21 }
  0xa9   :  { %v167_v25 = vsel %vm166_vm5, %v922_v18, %v163_v22 }
  0xaa   :  { %v172_v28 = vsel %vm169_vm6, %v171_v26, %v167_v25 }
 0x101   :  { %v178_v27 = vpop.permute.xlu0 %177 }
 0x102   :  { %v180_v29 = vmul.f32 %v178_v27, %v172_v28 }
 0x104   :  { %182 = vrot.lane.b32.xlu0 %v180_v29, %s1027_s9 }
 0x176   :  { %v183_v30 = vpop.permute.xlu0 %182 }
 0x177   :  { %v185_v31 = vadd.f32 %v183_v30, %v104_v13 }
 0x179   :  { %923 = vtanh.f32 %v185_v31 }
 0x17f   :  { %v924_v32 = vpop.eup %923 }
 0x180   :  { %188 = vrot.lane.b32.xlu1 %v924_v32, %s1027_s9 }
 0x1f2   :  { %v189_v33 = vpop.permute.xlu1 %188 }
 0x1f3   :  { %v191_v34 = vsub.f32 %v128_v7, %v189_v33 }
 0x1f5   :  { %193 = vrot.lane.b32.xlu1 %v191_v34, %s1028_s2 }
 0x267   :  { %v194_v35 = vpop.permute.xlu1 %193 }
 0x268   :  { %v196_v36 = vmul.f32 %v194_v35, %v172_v28 }
 0x26a   :  { %198 = vrot.lane.b32.xlu2 %v196_v36, %s1028_s2 }
 0x2c4   :  { %v199_v38 = vpop.permute.xlu2 %198 }
 0x2c5   :  { %v1135_v39 = vadd.f32 %v924_v32, %v199_v38 }
 0x2c7   :  { %218 = vrot.lane.b32.xlu2 %v1135_v39, %s1027_s9 }
 0x321   :  { %v219_v41 = vpop.permute.xlu2 %218 }
 0x322   :  { %887 = vmatmul.msk.f32.vlgmr.msrb.gmra.mxu2 %vm38_vm0, %v219_v41 }
 0x323   :  { %702 = vmatpush.msrb.mxu2 %v1065_v1  ;;  %v43_v1 = vld [vmem:[%s1283_s0 + $0x10] sm:$0xff] }
 0x324   :  { %879 = vmatmul.msk.f32.gmra.mxu0 %vm57_vm2, %v43_v1 }
 0x325   :  { %703 = vmatpush.msrb.mxu2 %v1070_v2 }
 0x327   :  { %704 = vmatpush.msrb.mxu2 %v1082_v5  ;;  %v1178_v5 = vpop.f32.mrf.mxu3 }
 0x329   :  { %705 = vmatpush.msrb.mxu2 %v1090_v6 }
 0x32f   :  { %v1180_v6 = vpop.f32.mrf.mxu3 }
 0x3a1   :  { %v109_v17 = vpop.f32.mrf.mxu0 }
 0x3a2   :  { %v110_v18 = vadd.f32 %v1120_v11, %v109_v17 }
 0x3a5   :  { %v239_v43 = vpop.f32.mrf.mxu2 }
 0x3a6   :  { %v262_v44 = vadd.f32 %v1113_v8, %v239_v43  ;;  %v242_v47 = vadd.f32 %v239_v43, %v107_v46  ;;  %v44_v43 = vld [vmem:[%s1283_s0 + $0x18] sm:$0xff] }
 0x3a7   :  { %880 = vmatmul.msk.f32.gmra.mxu0 %vm57_vm2, %v44_v43 }
 0x3a8   :  { %264 = vrot.lane.b32.xlu0 %v262_v44, %s1027_s9  ;;  %v888_v48 = vmul.f32 -1.442695, %v242_v47 }
 0x3aa   :  { %925 = vpow2.f32 %v888_v48 }
 0x3b0   :  { %v926_v49 = vpop.eup %925 }
 0x3b1   :  { %v246_v50 = vadd.f32 1.0, %v926_v49 }
 0x3b3   :  { %927 = vrcp.f32 %v246_v50  ;;  %v258_v56 = vand.u32 2147483648, %v246_v50  ;;  %vm252_vm8 = vweird.f32 %v246_v50  ;;  %v256_v57 = vand.u32 2147483647, %v246_v50 }
 0x3b5   :  { %v259_v59 = vor.u32 1.1754944e-38, %v258_v56  ;;  %vm257_vm10 = vcmp.eq.f32.partialorder %v256_v57, 8.507059e+37 }
 0x3b9   :  { %v928_v51 = vpop.eup %927 }
 0x3ba   :  { %v248_v52 = vmul.f32 %v928_v51, %v246_v50  ;;  %vm253_vm7 = vweird.f32 %v928_v51 }
 0x3bb   :  { %vm254_vm9 = vmor %vm252_vm8, %vm253_vm7 }
 0x3bc   :  { %v249_v53 = vsub.f32 1.0, %v248_v52 }
 0x3be   :  { %v250_v54 = vmul.f32 %v928_v51, %v249_v53 }
 0x3c0   :  { %v251_v55 = vadd.f32 %v928_v51, %v250_v54 }
 0x3c2   :  { %v255_v58 = vsel %vm254_vm9, %v928_v51, %v251_v55 }
 0x3c3   :  { %v260_v61 = vsel %vm257_vm10, %v259_v59, %v255_v58 }
 0x41a   :  { %v265_v60 = vpop.permute.xlu0 %264 }
 0x41b   :  { %v267_v62 = vmul.f32 %v265_v60, %v260_v61 }
 0x41d   :  { %269 = vrot.lane.b32.xlu1 %v267_v62, %s1027_s9 }
 0x424   :  { %v112_v49 = vpop.f32.mrf.mxu0 }
 0x425   :  { %v113_v50 = vadd.f32 %v1120_v11, %v112_v49 }
 0x48f   :  { %v270_v63 = vpop.permute.xlu1 %269 }
 0x490   :  { %v272_v0 = vadd.f32 %v270_v63, %v107_v46 }
 0x492   :  { %929 = vtanh.f32 %v272_v0 }
 0x498   :  { %v930_v3 = vpop.eup %929 }
 0x499   :  { %v274_v4 = vsub.f32 %v1135_v39, %v930_v3 }
 0x49b   :  { %276 = vrot.lane.b32.xlu2 %v274_v4, %s1029_s16 }
 0x4f5   :  { %v277_v7 = vpop.permute.xlu2 %276 }
 0x4f6   :  { %v279_v9 = vmul.f32 %v277_v7, %v260_v61 }
 0x4f8   :  { %281 = vrot.lane.b32.xlu0 %v279_v9, %s1028_s2 }
 0x56a   :  { %v282_v13 = vpop.permute.xlu0 %281 }
 0x56b   :  { %v1169_v14 = vadd.f32 %v930_v3, %v282_v13 }
 0x56d   :  { %296 = vrot.lane.b32.xlu1 %v1169_v14, %s1027_s9 }
 0x5df   :  { %v297_v2 = vpop.permute.xlu1 %296 }
 0x5e0   :  { %889 = vmatmul.msk.f32.vlgmr.msrb.gmra.mxu3 %vm38_vm0, %v297_v2 }
 0x663   :  { %v317_v15 = vpop.f32.mrf.mxu3 }
 0x664   :  { %v340_v16 = vadd.f32 %v1113_v8, %v317_v15  ;;  %v320_v19 = vadd.f32 %v317_v15, %v110_v18 }
 0x666   :  { %342 = vrot.lane.b32.xlu2 %v340_v16, %s1027_s9  ;;  %v890_v20 = vmul.f32 -1.442695, %v320_v19  ;;  %v45_v16 = vld [vmem:[%s1283_s0 + $0x20] sm:$0xff] }
 0x667   :  { %881 = vmatmul.msk.f32.gmra.mxu0 %vm57_vm2, %v45_v16 }
 0x668   :  { %931 = vpow2.f32 %v890_v20 }
 0x66e   :  { %v932_v21 = vpop.eup %931 }
 0x66f   :  { %v324_v22 = vadd.f32 1.0, %v932_v21 }
 0x671   :  { %933 = vrcp.f32 %v324_v22  ;;  %v336_v28 = vand.u32 2147483648, %v324_v22  ;;  %vm330_vm12 = vweird.f32 %v324_v22  ;;  %v334_v29 = vand.u32 2147483647, %v324_v22 }
 0x673   :  { %v337_v31 = vor.u32 1.1754944e-38, %v336_v28  ;;  %vm335_vm14 = vcmp.eq.f32.partialorder %v334_v29, 8.507059e+37 }
 0x677   :  { %v934_v23 = vpop.eup %933 }
 0x678   :  { %v326_v24 = vmul.f32 %v934_v23, %v324_v22  ;;  %vm331_vm11 = vweird.f32 %v934_v23 }
 0x679   :  { %vm332_vm13 = vmor %vm330_vm12, %vm331_vm11 }
 0x67a   :  { %v327_v25 = vsub.f32 1.0, %v326_v24 }
 0x67c   :  { %v328_v26 = vmul.f32 %v934_v23, %v327_v25 }
 0x67e   :  { %v329_v27 = vadd.f32 %v934_v23, %v328_v26 }
 0x680   :  { %v333_v30 = vsel %vm332_vm13, %v934_v23, %v329_v27 }
 0x681   :  { %v338_v33 = vsel %vm335_vm14, %v337_v31, %v333_v30 }
 0x6c0   :  { %v343_v32 = vpop.permute.xlu2 %342 }
 0x6c1   :  { %v345_v34 = vmul.f32 %v343_v32, %v338_v33 }
 0x6c3   :  { %347 = vrot.lane.b32.xlu0 %v345_v34, %s1027_s9 }
 0x6e4   :  { %v115_v20 = vpop.f32.mrf.mxu0 }
 0x6e5   :  { %v116_v21 = vadd.f32 %v1120_v11, %v115_v20 }
 0x735   :  { %v348_v35 = vpop.permute.xlu0 %347 }
 0x736   :  { %v350_v36 = vadd.f32 %v348_v35, %v110_v18 }
 0x738   :  { %935 = vtanh.f32 %v350_v36 }
 0x73e   :  { %v936_v37 = vpop.eup %935 }
 0x73f   :  { %v352_v38 = vsub.f32 %v1169_v14, %v936_v37 }
 0x741   :  { %354 = vrot.lane.b32.xlu1 %v352_v38, %s1029_s16 }
 0x7b3   :  { %v355_v40 = vpop.permute.xlu1 %354 }
 0x7b4   :  { %v357_v41 = vmul.f32 %v355_v40, %v338_v33 }
 0x7b6   :  { %359 = vrot.lane.b32.xlu2 %v357_v41, %s1028_s2 }
 0x810   :  { %v360_v44 = vpop.permute.xlu2 %359 }
 0x811   :  { %v1193_v45 = vadd.f32 %v936_v37, %v360_v44 }
 0x813   :  { %374 = vrot.lane.b32.xlu0 %v1193_v45, %s1027_s9 }
 0x885   :  { %v375_v46 = vpop.permute.xlu0 %374 }
 0x886   :  { %891 = vmatmul.msk.f32.vlgmr.msrb.gmra.mxu1 %vm38_vm0, %v375_v46 }
 0x903   :  { %v395_v47 = vpop.f32.mrf.mxu1 }
 0x904   :  { %v418_v48 = vadd.f32 %v1113_v8, %v395_v47  ;;  %v398_v51 = vadd.f32 %v395_v47, %v113_v50 }
 0x906   :  { %420 = vrot.lane.b32.xlu1 %v418_v48, %s1027_s9  ;;  %v892_v52 = vmul.f32 -1.442695, %v398_v51 }
 0x908   :  { %937 = vpow2.f32 %v892_v52  ;;  %v119_v52 = vadd.f32 %v1120_v11, %v1148_v42 }
 0x90e   :  { %v938_v53 = vpop.eup %937 }
 0x90f   :  { %v402_v54 = vadd.f32 1.0, %v938_v53 }
 0x911   :  { %939 = vrcp.f32 %v402_v54  ;;  %v414_v60 = vand.u32 2147483648, %v402_v54  ;;  %vm408_vm1 = vweird.f32 %v402_v54  ;;  %v412_v61 = vand.u32 2147483647, %v402_v54 }
 0x913   :  { %v415_v63 = vor.u32 1.1754944e-38, %v414_v60  ;;  %vm413_vm4 = vcmp.eq.f32.partialorder %v412_v61, 8.507059e+37 }
 0x917   :  { %v940_v55 = vpop.eup %939 }
 0x918   :  { %v404_v56 = vmul.f32 %v940_v55, %v402_v54  ;;  %vm409_vm15 = vweird.f32 %v940_v55 }
 0x919   :  { %vm410_vm3 = vmor %vm408_vm1, %vm409_vm15 }
 0x91a   :  { %v405_v57 = vsub.f32 1.0, %v404_v56 }
 0x91c   :  { %v406_v58 = vmul.f32 %v940_v55, %v405_v57 }
 0x91e   :  { %v407_v59 = vadd.f32 %v940_v55, %v406_v58 }
 0x920   :  { %v411_v62 = vsel %vm410_vm3, %v940_v55, %v407_v59 }
 0x921   :  { %v416_v3 = vsel %vm413_vm4, %v415_v63, %v411_v62 }
 0x978   :  { %v421_v0 = vpop.permute.xlu1 %420 }
 0x979   :  { %v423_v4 = vmul.f32 %v421_v0, %v416_v3 }
 0x97b   :  { %425 = vrot.lane.b32.xlu2 %v423_v4, %s1027_s9 }
 0x9d5   :  { %v426_v7 = vpop.permute.xlu2 %425 }
 0x9d6   :  { %v428_v9 = vadd.f32 %v426_v7, %v113_v50 }
 0x9d8   :  { %941 = vtanh.f32 %v428_v9 }
 0x9de   :  { %v942_v10 = vpop.eup %941 }
 0x9df   :  { %v430_v12 = vsub.f32 %v1193_v45, %v942_v10 }
 0x9e1   :  { %432 = vrot.lane.b32.xlu0 %v430_v12, %s1029_s16 }
 0xa53   :  { %v433_v13 = vpop.permute.xlu0 %432 }
 0xa54   :  { %v435_v1 = vmul.f32 %v433_v13, %v416_v3 }
 0xa56   :  { %437 = vrot.lane.b32.xlu1 %v435_v1, %s1028_s2 }
 0xac8   :  { %v438_v2 = vpop.permute.xlu1 %437 }
 0xac9   :  { %v1205_v15 = vadd.f32 %v942_v10, %v438_v2 }
 0xacb   :  { %452 = vrot.lane.b32.xlu2 %v1205_v15, %s1027_s9 }
 0xb25   :  { %v453_v17 = vpop.permute.xlu2 %452 }
 0xb26   :  { %893 = vmatmul.msk.f32.vlgmr.msra.gmra.mxu2 %vm38_vm0, %v453_v17 }
 0xba9   :  { %v473_v18 = vpop.f32.mrf.mxu2 }
 0xbaa   :  { %v496_v19 = vadd.f32 %v1113_v8, %v473_v18  ;;  %v476_v22 = vadd.f32 %v473_v18, %v116_v21 }
 0xbac   :  { %498 = vrot.lane.b32.xlu0 %v496_v19, %s1027_s9  ;;  %v894_v23 = vmul.f32 -1.442695, %v476_v22 }
 0xbae   :  { %943 = vpow2.f32 %v894_v23 }
 0xbb4   :  { %v944_v24 = vpop.eup %943 }
 0xbb5   :  { %v480_v25 = vadd.f32 1.0, %v944_v24 }
 0xbb7   :  { %945 = vrcp.f32 %v480_v25  ;;  %v492_v31 = vand.u32 2147483648, %v480_v25  ;;  %vm486_vm5 = vweird.f32 %v480_v25  ;;  %v490_v32 = vand.u32 2147483647, %v480_v25 }
 0xbb9   :  { %v493_v34 = vor.u32 1.1754944e-38, %v492_v31  ;;  %vm491_vm7 = vcmp.eq.f32.partialorder %v490_v32, 8.507059e+37 }
 0xbbd   :  { %v946_v26 = vpop.eup %945 }
 0xbbe   :  { %v482_v27 = vmul.f32 %v946_v26, %v480_v25  ;;  %vm487_vm2 = vweird.f32 %v946_v26 }
 0xbbf   :  { %vm488_vm6 = vmor %vm486_vm5, %vm487_vm2 }
 0xbc0   :  { %v483_v28 = vsub.f32 1.0, %v482_v27 }
 0xbc2   :  { %v484_v29 = vmul.f32 %v946_v26, %v483_v28 }
 0xbc4   :  { %v485_v30 = vadd.f32 %v946_v26, %v484_v29 }
 0xbc6   :  { %v489_v33 = vsel %vm488_vm6, %v946_v26, %v485_v30 }
 0xbc7   :  { %v494_v36 = vsel %vm491_vm7, %v493_v34, %v489_v33 }
 0xc1e   :  { %v499_v35 = vpop.permute.xlu0 %498 }
 0xc1f   :  { %v501_v37 = vmul.f32 %v499_v35, %v494_v36 }
 0xc21   :  { %503 = vrot.lane.b32.xlu1 %v501_v37, %s1027_s9 }
 0xc93   :  { %v504_v38 = vpop.permute.xlu1 %503 }
 0xc94   :  { %v506_v40 = vadd.f32 %v504_v38, %v116_v21  ;;  %v122_v21 = vadd.f32 %v1120_v11, %v1178_v5 }
 0xc96   :  { %947 = vtanh.f32 %v506_v40 }
 0xc9c   :  { %v948_v41 = vpop.eup %947 }
 0xc9d   :  { %v508_v43 = vsub.f32 %v1205_v15, %v948_v41 }
 0xc9f   :  { %510 = vrot.lane.b32.xlu2 %v508_v43, %s1029_s16 }
 0xcf9   :  { %v511_v44 = vpop.permute.xlu2 %510 }
 0xcfa   :  { %v513_v46 = vmul.f32 %v511_v44, %v494_v36 }
 0xcfc   :  { %515 = vrot.lane.b32.xlu0 %v513_v46, %s1028_s2 }
 0xd6e   :  { %v516_v47 = vpop.permute.xlu0 %515 }
 0xd6f   :  { %v1221_v48 = vadd.f32 %v948_v41, %v516_v47 }
 0xd71   :  { %530 = vrot.lane.b32.xlu1 %v1221_v48, %s1027_s9 }
 0xde3   :  { %v531_v49 = vpop.permute.xlu1 %530 }
 0xde4   :  { %895 = vmatmul.msk.f32.vlgmr.msra.gmra.mxu3 %vm38_vm0, %v531_v49 }
 0xe67   :  { %v551_v50 = vpop.f32.mrf.mxu3 }
 0xe68   :  { %v574_v51 = vadd.f32 %v1113_v8, %v551_v50  ;;  %v554_v53 = vadd.f32 %v551_v50, %v119_v52 }
 0xe6a   :  { %576 = vrot.lane.b32.xlu2 %v574_v51, %s1027_s9  ;;  %v896_v54 = vmul.f32 -1.442695, %v554_v53 }
 0xe6c   :  { %949 = vpow2.f32 %v896_v54 }
 0xe72   :  { %v950_v55 = vpop.eup %949 }
 0xe73   :  { %v558_v56 = vadd.f32 1.0, %v950_v55 }
 0xe75   :  { %951 = vrcp.f32 %v558_v56  ;;  %v570_v62 = vand.u32 2147483648, %v558_v56  ;;  %vm564_vm9 = vweird.f32 %v558_v56  ;;  %v568_v63 = vand.u32 2147483647, %v558_v56 }
 0xe77   :  { %v571_v3 = vor.u32 1.1754944e-38, %v570_v62  ;;  %vm569_vm11 = vcmp.eq.f32.partialorder %v568_v63, 8.507059e+37 }
 0xe7b   :  { %v952_v57 = vpop.eup %951 }
 0xe7c   :  { %v560_v58 = vmul.f32 %v952_v57, %v558_v56  ;;  %vm565_vm8 = vweird.f32 %v952_v57 }
 0xe7d   :  { %vm566_vm10 = vmor %vm564_vm9, %vm565_vm8 }
 0xe7e   :  { %v561_v59 = vsub.f32 1.0, %v560_v58  ;;  %v1030_v58 = vmov 0  }
 0xe7f   :  { %914 = vset.pattern.permute.xlu0 %v1030_v58  ;;  %916 = vset.pattern.permute.xlu1 %v1030_v58 }
 0xe80   :  { %v562_v60 = vmul.f32 %v952_v57, %v561_v59  ;;  %915 = vset.pattern.permute.xlu2 %v1030_v58 }
 0xe82   :  { %v563_v61 = vadd.f32 %v952_v57, %v562_v60 }
 0xe84   :  { %v567_v0 = vsel %vm566_vm10, %v952_v57, %v563_v61  ;;  %v127_v57 = vld [vmem:[%s1284_s1 + $0x8] sm:$0xff] }
 0xe85   :  { %v572_v4 = vsel %vm569_vm11, %v571_v3, %v567_v0  ;;  %vm206_vm1 = vcmp.eq.f32.partialorder %v127_v57, 1.0  ;;  %vm366_vm6 = vcmp.eq.f32.partialorder %v127_v57, 3.0  ;;  %vm522_vm7 = vcmp.eq.f32.partialorder %v127_v57, 5.0 }
 0xe86   :  { %vm600_vm8 = vcmp.eq.f32.partialorder %v127_v57, 6.0  ;;  %vm756_vm9 = vcmp.eq.f32.partialorder %v127_v57, 8.0  ;;  %vm288_vm10 = vcmp.eq.f32.partialorder %v127_v57, 2.0  ;;  %vm444_vm11 = vcmp.eq.f32.partialorder %v127_v57, 4.0 }
 0xec4   :  { %v577_v42 = vpop.permute.xlu2 %576 }
 0xec5   :  { %v579_v7 = vmul.f32 %v577_v42, %v572_v4 }
 0xec7   :  { %581 = vrot.lane.b32.xlu0 %v579_v7, %s1027_s9 }
 0xf39   :  { %v582_v9 = vpop.permute.xlu0 %581 }
 0xf3a   :  { %v584_v10 = vadd.f32 %v582_v9, %v119_v52  ;;  %v125_v52 = vadd.f32 %v1120_v11, %v1180_v6  ;;  %v129_v9 = vld [vmem:[#allocation3] sm:$0xff] }
 0xf3c   :  { %953 = vtanh.f32 %v584_v10  ;;  %v367_v10 = vsel %vm366_vm6, 1, %v1030_v58 }
 0xf42   :  { %v954_v12 = vpop.eup %953 }
 0xf43   :  { %v586_v13 = vsub.f32 %v1221_v48, %v954_v12 }
 0xf45   :  { %588 = vrot.lane.b32.xlu1 %v586_v13, %s1029_s16  ;;  %v601_v13 = vsel %vm600_vm8, 1, %v1030_v58 }
 0xfb7   :  { %v589_v1 = vpop.permute.xlu1 %588 }
 0xfb8   :  { %v591_v2 = vmul.f32 %v589_v1, %v572_v4 }
 0xfba   :  { %593 = vrot.lane.b32.xlu2 %v591_v2, %s1028_s2 }
0x1014   :  { %v594_v16 = vpop.permute.xlu2 %593 }
0x1015   :  { %v1234_v17 = vadd.f32 %v954_v12, %v594_v16  ;;  %v523_v12 = vsel %vm522_vm7, 1, %v1030_v58  ;;  %v757_v16 = vsel %vm756_vm9, 1, %v1030_v58 }
0x1017   :  { %608 = vrot.lane.b32.xlu0 %v1234_v17, %s1027_s9 }
0x1089   :  { %v609_v18 = vpop.permute.xlu0 %608 }
0x108a   :  { %897 = vmatmul.msk.f32.vlgmr.msra.gmra.mxu1 %vm38_vm0, %v609_v18 }
0x1107   :  { %v629_v19 = vpop.f32.mrf.mxu1 }
0x1108   :  { %v652_v20 = vadd.f32 %v1113_v8, %v629_v19  ;;  %v632_v22 = vadd.f32 %v629_v19, %v122_v21 }
0x110a   :  { %654 = vrot.lane.b32.xlu1 %v652_v20, %s1027_s9  ;;  %v898_v23 = vmul.f32 -1.442695, %v632_v22  ;;  %v289_v20 = vsel %vm288_vm10, 1, %v1030_v58 }
0x110c   :  { %955 = vpow2.f32 %v898_v23 }
0x1112   :  { %v956_v24 = vpop.eup %955 }
0x1113   :  { %v636_v25 = vadd.f32 1.0, %v956_v24 }
0x1115   :  { %957 = vrcp.f32 %v636_v25  ;;  %v648_v31 = vand.u32 2147483648, %v636_v25  ;;  %vm642_vm13 = vweird.f32 %v636_v25  ;;  %v646_v32 = vand.u32 2147483647, %v636_v25 }
0x1117   :  { %v649_v34 = vor.u32 1.1754944e-38, %v648_v31  ;;  %vm647_vm15 = vcmp.eq.f32.partialorder %v646_v32, 8.507059e+37 }
0x111b   :  { %v958_v26 = vpop.eup %957 }
0x111c   :  { %v638_v27 = vmul.f32 %v958_v26, %v636_v25  ;;  %vm643_vm12 = vweird.f32 %v958_v26 }
0x111d   :  { %vm644_vm14 = vmor %vm642_vm13, %vm643_vm12  ;;  %vm678_vm12 = vcmp.eq.f32.partialorder %v127_v57, 7.0 }
0x111e   :  { %v639_v28 = vsub.f32 1.0, %v638_v27  ;;  %v679_v22 = vsel %vm678_vm12, 1, %v1030_v58 }
0x1120   :  { %v640_v29 = vmul.f32 %v958_v26, %v639_v28 }
0x1122   :  { %v641_v30 = vadd.f32 %v958_v26, %v640_v29 }
0x1124   :  { %v645_v33 = vsel %vm644_vm14, %v958_v26, %v641_v30 }
0x1125   :  { %v650_v35 = vsel %vm647_vm15, %v649_v34, %v645_v33 }
0x117c   :  { %v655_v5 = vpop.permute.xlu1 %654 }
0x117d   :  { %v657_v36 = vmul.f32 %v655_v5, %v650_v35 }
0x117f   :  { %659 = vrot.lane.b32.xlu2 %v657_v36, %s1027_s9 }
0x11d9   :  { %v660_v37 = vpop.permute.xlu2 %659 }
0x11da   :  { %v662_v38 = vadd.f32 %v660_v37, %v122_v21  ;;  %v445_v21 = vsel %vm444_vm11, 1, %v1030_v58 }
0x11dc   :  { %959 = vtanh.f32 %v662_v38 }
0x11e2   :  { %v960_v40 = vpop.eup %959 }
0x11e3   :  { %v664_v41 = vsub.f32 %v1234_v17, %v960_v40 }
0x11e5   :  { %666 = vrot.lane.b32.xlu0 %v664_v41, %s1029_s16 }
0x1257   :  { %v667_v43 = vpop.permute.xlu0 %666 }
0x1258   :  { %v669_v44 = vmul.f32 %v667_v43, %v650_v35  ;;  %v778_v43 = vld [vmem:[#allocation4 + $0x18] sm:$0xff] }
0x125a   :  { %671 = vrot.lane.b32.xlu1 %v669_v44, %s1028_s2  ;;  %v809_v44 = vld [vmem:[#allocation4 + $0x30] sm:$0xff] }
0x125b   :  { %826 = vmatpush.msrb.mxu1 %v809_v44 }
0x12cc   :  { %v672_v46 = vpop.permute.xlu1 %671 }
0x12cd   :  { %v1247_v47 = vadd.f32 %v960_v40, %v672_v46  ;;  %v808_v46 = vld [vmem:[#allocation4 + $0x20] sm:$0xff] }
0x12ce   :  { %827 = vmatpush.msrb.mxu1 %v808_v46 }
0x12cf   :  { %686 = vrot.lane.b32.xlu2 %v1247_v47, %s1027_s9 }
0x1329   :  { %v687_v49 = vpop.permute.xlu2 %686 }
0x132a   :  { %899 = vmatmul.msk.f32.vlgmr.msrb.gmra.mxu2 %vm38_vm0, %v687_v49 }
0x13ad   :  { %v707_v50 = vpop.f32.mrf.mxu2 }
0x13ae   :  { %v730_v51 = vadd.f32 %v1113_v8, %v707_v50  ;;  %v710_v53 = vadd.f32 %v707_v50, %v125_v52  ;;  %v207_v8 = vsel %vm206_vm1, 1, %v1030_v58  ;;  %v807_v50 = vld [vmem:[#allocation4 + $0x10] sm:$0xff] }
0x13af   :  { %828 = vmatpush.msrb.mxu1 %v807_v50  ;;  %v834_v58 = vld [vmem:[%s1284_s1] sm:$0xff]  ;;  %s1031_s1 = smov [#allocation7]  }
0x13b0   :  { %732 = vrot.lane.b32.xlu0 %v730_v51, %s1027_s9  ;;  %v900_v54 = vmul.f32 -1.442695, %v710_v53  ;;  %v806_v51 = vld [vmem:[#allocation4] sm:$0xff]  ;;  %s864_s29 = sshll.u32 %s1031_s1, 4  ;;  %s865_s29 = int_to_ptr.vmem [resolvable:$true] %s864_s29 }
0x13b1   :  { %829 = vmatpush.msrb.mxu1 %v806_v51 }
0x13b2   :  { %961 = vpow2.f32 %v900_v54 }
0x13b8   :  { %v962_v55 = vpop.eup %961  ;;  %209 = vperm.xlu0 %914, %v207_v8  }
0x13b9   :  { %v714_v56 = vadd.f32 1.0, %v962_v55 }
0x13bb   :  { %963 = vrcp.f32 %v714_v56  ;;  %v726_v62 = vand.u32 2147483648, %v714_v56  ;;  %vm720_vm4 = vweird.f32 %v714_v56  ;;  %v724_v63 = vand.u32 2147483647, %v714_v56 }
0x13bd   :  { %v727_v3 = vor.u32 1.1754944e-38, %v726_v62  ;;  %vm725_vm5 = vcmp.eq.f32.partialorder %v724_v63, 8.507059e+37 }
0x13c0   :  { %525 = vperm.xlu0 %914, %v523_v12  }
0x13c1   :  { %v964_v59 = vpop.eup %963 }
0x13c2   :  { %v716_v60 = vmul.f32 %v964_v59, %v714_v56  ;;  %vm721_vm3 = vweird.f32 %v964_v59  ;;  %v810_v56 = vld [vmem:[#allocation4 + $0x40] ss:$0 sm:$0xff] }
0x13c3   :  { %vm722_vm2 = vmor %vm720_vm4, %vm721_vm3 }
0x13c4   :  { %v717_v11 = vsub.f32 1.0, %v716_v60 }
0x13c6   :  { %v718_v6 = vmul.f32 %v964_v59, %v717_v11 }
0x13c8   :  { %v719_v61 = vadd.f32 %v964_v59, %v718_v6 }
0x13ca   :  { %v723_v0 = vsel %vm722_vm2, %v964_v59, %v719_v61 }
0x13cb   :  { %v728_v4 = vsel %vm725_vm5, %v727_v3, %v723_v0 }
0x1422   :  { %v733_v42 = vpop.permute.xlu0 %732 }
0x1423   :  { %v735_v7 = vmul.f32 %v733_v42, %v728_v4 }
0x1425   :  { %737 = vrot.lane.b32.xlu1 %v735_v7, %s1027_s9 }
0x142a   :  { %v210_v28 = vpop.permute.xlu0 %209 }
0x142b   :  { %vm211_vm13 = vcmp.eq.s32.totalorder %v210_v28, 1 }
0x142d   :  { %213 = vrot.lane.b32.xlu1 %v129_v9, %s1027_s9 }
0x1432   :  { %v526_v33 = vpop.permute.xlu0 %525 }
0x1433   :  { %vm527_vm3 = vcmp.eq.s32.totalorder %v526_v33, 1 }
0x1435   :  { %369 = vperm.xlu1 %916, %v367_v10  }
0x143d   :  { %603 = vperm.xlu1 %916, %v601_v13  }
0x1445   :  { %759 = vperm.xlu1 %916, %v757_v16  }
0x1497   :  { %v738_v1 = vpop.permute.xlu1 %737 }
0x1498   :  { %v740_v2 = vadd.f32 %v738_v1, %v125_v52  ;;  %v781_v52 = vld [vmem:[#allocation4 + $0x48] ss:$0 sm:$0xff] }
0x149a   :  { %965 = vtanh.f32 %v740_v2 }
0x149f   :  { %v214_v25 = vpop.permute.xlu1 %213 }
0x14a0   :  { %v966_v18 = vpop.eup %965  ;;  %v216_v30 = vsel %vm211_vm13, %v1135_v39, %v214_v25 }
0x14a1   :  { %v742_v19 = vsub.f32 %v1247_v47, %v966_v18 }
0x14a3   :  { %744 = vrot.lane.b32.xlu2 %v742_v19, %s1029_s16 }
0x14a7   :  { %v370_v27 = vpop.permute.xlu1 %369 }
0x14a8   :  { %vm371_vm15 = vcmp.eq.s32.totalorder %v370_v27, 1 }
0x14ab   :  { %291 = vperm.xlu2 %915, %v289_v20  }
0x14af   :  { %v604_v32 = vpop.permute.xlu1 %603 }
0x14b0   :  { %vm605_vm4 = vcmp.eq.s32.totalorder %v604_v32, 1 }
0x14b3   :  { %447 = vperm.xlu2 %915, %v445_v21  }
0x14b7   :  { %v760_v37 = vpop.permute.xlu1 %759 }
0x14b8   :  { %vm761_vm5 = vcmp.eq.s32.totalorder %v760_v37, 1 }
0x14bb   :  { %681 = vperm.xlu2 %915, %v679_v22  }
0x14fd   :  { %v745_v23 = vpop.permute.xlu2 %744 }
0x14fe   :  { %v747_v24 = vmul.f32 %v745_v23, %v728_v4 }
0x1500   :  { %749 = vrot.lane.b32.xlu0 %v747_v24, %s1028_s2 }
0x1505   :  { %v292_v26 = vpop.permute.xlu2 %291 }
0x1506   :  { %vm293_vm14 = vcmp.eq.s32.totalorder %v292_v26, 1 }
0x1507   :  { %v294_v31 = vsel %vm293_vm14, %v1169_v14, %v216_v30 }
0x1508   :  { %v372_v34 = vsel %vm371_vm15, %v1193_v45, %v294_v31  ;;  %v780_v45 = vld [vmem:[#allocation4 + $0x38] sm:$0xff] }
0x1509   :  { %797 = vmatpush.msrb.mxu3 %v780_v45 }
0x150d   :  { %v448_v29 = vpop.permute.xlu2 %447 }
0x150e   :  { %vm449_vm1 = vcmp.eq.s32.totalorder %v448_v29, 1 }
0x150f   :  { %v450_v5 = vsel %vm449_vm1, %v1205_v15, %v372_v34  ;;  %v779_v15 = vld [vmem:[#allocation4 + $0x28] sm:$0xff] }
0x1510   :  { %v528_v36 = vsel %vm527_vm3, %v1221_v48, %v450_v5  ;;  %798 = vmatpush.msrb.mxu3 %v779_v15  ;;  %v777_v48 = vld [vmem:[#allocation4 + $0x8] sm:$0xff] }
0x1511   :  { %v606_v39 = vsel %vm605_vm4, %v1234_v17, %v528_v36 }
0x1512   :  { %799 = vmatpush.msrb.mxu3 %v778_v43 }
0x1514   :  { %800 = vmatpush.msrb.mxu3 %v777_v48 }
0x1515   :  { %v682_v35 = vpop.permute.xlu2 %681 }
0x1516   :  { %vm683_vm2 = vcmp.eq.s32.totalorder %v682_v35, 1 }
0x1517   :  { %v684_v14 = vsel %vm683_vm2, %v1247_v47, %v606_v39 }
0x1572   :  { %v750_v38 = vpop.permute.xlu0 %749 }
0x1573   :  { %v752_v40 = vadd.f32 %v966_v18, %v750_v38 }
0x1575   :  { %v762_v41 = vsel %vm761_vm5, %v752_v40, %v684_v14 }
0x1576   :  { %769 = vrot.lane.b32.xlu2 %v762_v41, %s1027_s9 }
0x157e   :  { %764 = vrot.lane.b32.xlu2 %v752_v40, %s1027_s9 }
0x15d0   :  { %v770_v17 = vpop.permute.xlu2 %769 }
0x15d1   :  { %772 = vst.msk [vmem:[#allocation3] sm:$0xff] %vm38_vm0, %v770_v17 }
0x15d8   :  { %v765_v47 = vpop.permute.xlu2 %764  ;;  %v776_v49 = vld [vmem:[#allocation3] sm:$0xff] }
0x15d9   :  { %767 = vst.msk [vmem:[#allocation2] sm:$0xff] %vm38_vm0, %v765_v47  ;;  %901 = vmatmul.msk.f32.vlgmr.msrb.gmra.mxu3 %vm38_vm0, %v776_v49 }
0x165c   :  { %v802_v53 = vpop.f32.mrf.mxu3 }
0x165d   :  { %v803_v54 = vadd.f32 %v802_v53, %v781_v52 }
0x165f   :  { %v805_v55 = vmax.f32 %v803_v54, 0.0 }
0x1661   :  { %902 = vmatmul.msk.f32.vlgmr.msrb.gmra.mxu1 %vm38_vm0, %v805_v55 }
0x16de   :  { %v831_v57 = vpop.f32.mrf.mxu1 }
0x16df   :  { %v832_v8 = vadd.f32 %v831_v57, %v810_v56 }
0x16e1   :  { %v835_v59 = vadd.f32 %v834_v58, %v832_v8 }
0x16e3   :  { %836 = vmax.xlane.f32.xlu0 %v835_v59 }
0x1756   :  { %v837_v60 = vpop.xlane.xlu0 %836 }
0x1757   :  { %v838_v11 = vsub.f32 %v835_v59, %v837_v60 }
0x1759   :  { %v839_v6 = vmul.f32 1.442695, %v838_v11 }
0x175b   :  { %967 = vpow2.f32 %v839_v6 }
0x1761   :  { %v968_v61 = vpop.eup %967 }
0x1762   :  { %841 = vadd.xlane.f32.xlu1 %v968_v61 }
0x17d5   :  { %v842_v62 = vpop.xlane.xlu1 %841 }
0x17d6   :  { %969 = vrcp.f32 %v842_v62  ;;  %v854_v42 = vand.u32 2147483648, %v842_v62  ;;  %v852_v7 = vand.u32 2147483647, %v842_v62  ;;  %vm848_vm6 = vweird.f32 %v842_v62 }
0x17d8   :  { %v855_v10 = vor.u32 1.1754944e-38, %v854_v42  ;;  %vm853_vm8 = vcmp.eq.f32.partialorder %v852_v7, 8.507059e+37 }
0x17dc   :  { %v970_v63 = vpop.eup %969 }
0x17dd   :  { %v844_v0 = vmul.f32 %v970_v63, %v842_v62  ;;  %vm849_vm0 = vweird.f32 %v970_v63 }
0x17de   :  { %vm850_vm7 = vmor %vm848_vm6, %vm849_vm0 }
0x17df   :  { %v845_v3 = vsub.f32 1.0, %v844_v0 }
0x17e1   :  { %v846_v4 = vmul.f32 %v970_v63, %v845_v3 }
0x17e3   :  { %v847_v9 = vadd.f32 %v970_v63, %v846_v4 }
0x17e5   :  { %v851_v12 = vsel %vm850_vm7, %v970_v63, %v847_v9 }
0x17e6   :  { %v856_v13 = vsel %vm853_vm8, %v855_v10, %v851_v12 }
0x17e7   :  { %v857_v1 = vmul.f32 %v968_v61, %v856_v13 }
0x17e9   :  { %858 = vst [vmem:[#allocation7] sm:$0xff] %v857_v1 }
0x17ea   :  { %869 = dma.vmem_to_hbm [thread:$0]  %s865_s29, 128, %s867_s6, [#allocation6]  }
0x17eb   :  { %1021 = dma.done.wait [#allocation6], 128  }
0x17ec   :  { %1022 = vsyncadd [#allocation6], 4294967168 }
0x17ed   :  { %874 = vsyncpa [#allocation5], 1 }
0x17ee   :  { %875 = vsyncpa [#allocation6], 1 }

</bundles_post_ra>
